<compile_context>
chip_gen: v7x
topology: tpu7x:2x2x1
jax: 0.10.0
libtpu: 0.0.40
codegen_flags: <defaults>
</compile_context>

<pallas_src>
import functools

import jax
import jax.numpy as jnp
from jax.experimental import pallas as pl
from jax.experimental.pallas import tpu as pltpu


def _round_up(x: int, m: int) -> int:
    return ((x + m - 1) // m) * m


def _erf_f32(x):
    """Abramowitz & Stegun 7.1.26 erf approximation (max abs err ~1.5e-7).

    Uses only exp / mul / add / where, all of which lower cleanly in Mosaic
    (avoids depending on an erf primitive lowering).
    """
    a1 = 0.254829592
    a2 = -0.284496736
    a3 = 1.421413741
    a4 = -1.453152027
    a5 = 1.061405429
    p = 0.3275911
    sgn = jnp.where(x < 0.0, -1.0, 1.0)
    ax = jnp.abs(x)
    t = 1.0 / (1.0 + p * ax)
    poly = t * (a1 + t * (a2 + t * (a3 + t * (a4 + t * a5))))
    return sgn * (1.0 - poly * jnp.exp(-ax * ax))


def _gelu_exact_f32(x):
    """Exact (erf-based) GELU, matching PyTorch nn.GELU() default."""
    return 0.5 * x * (1.0 + _erf_f32(x * 0.7071067811865476))


def _mlp_kernel(x_ref, w1_ref, w2_ref, o_ref):
    # x_ref: (tm, Cin), w1_ref: (Cin, H), w2_ref: (H, Cout), o_ref: (tm, Cout)
    # fc1: MXU matmul with f32 accumulation, operands stay in native dtype.
    h = jnp.dot(x_ref[...], w1_ref[...], preferred_element_type=jnp.float32)
    # GELU in f32 (v5e has no bf16 VPU/EUP path).
    h = _gelu_exact_f32(h)
    # fc2: cast activation back to the weight dtype for a full-rate MXU pass.
    y = jnp.dot(h.astype(w2_ref.dtype), w2_ref[...],
                preferred_element_type=jnp.float32)
    o_ref[...] = y.astype(o_ref.dtype)


@functools.partial(jax.jit, static_argnames=("block_m",))
def mlp_forward(x, w1, w2, *, block_m: int = 256):
    """x: (..., in_ch); w1: (in_ch, hidden); w2: (hidden, out_ch)."""
    *lead, in_ch = x.shape
    hidden = w1.shape[1]
    out_ch = w2.shape[1]

    # Flatten all leading dims into one M axis so sublanes are filled and a
    # single grid covers the whole problem.
    m_total = 1
    for d in lead:
        m_total *= d
    x2 = x.reshape(m_total, in_ch)

    # Tile size along M: multiple of 8 (sublane), capped by block_m.
    tm = min(block_m, _round_up(m_total, 8))
    m_pad = _round_up(m_total, tm)
    if m_pad != m_total:
        x2 = jnp.pad(x2, ((0, m_pad - m_total), (0, 0)))

    grid = (m_pad // tm,)

    out = pl.pallas_call(
        _mlp_kernel,
        out_shape=jax.ShapeDtypeStruct((m_pad, out_ch), x.dtype),
        grid_spec=pltpu.PrefetchScalarGridSpec(
            num_scalar_prefetch=0,
            grid=grid,
            in_specs=[
                pl.BlockSpec((tm, in_ch), lambda i: (i, 0)),       # x tile
                pl.BlockSpec((in_ch, hidden), lambda i: (0, 0)),   # W1 (const)
                pl.BlockSpec((hidden, out_ch), lambda i: (0, 0)),  # W2 (const)
            ],
            out_specs=pl.BlockSpec((tm, out_ch), lambda i: (i, 0)),
        ),
        compiler_params=pltpu.CompilerParams(
            dimension_semantics=("parallel",)),
    )(x2, w1, w2)

    if m_pad != m_total:
        out = out[:m_total]
    return out.reshape(*lead, out_ch)


def mlp_ref(x, w1, w2):
    """Plain JAX reference: GELU(x @ W1) @ W2 with exact (erf) GELU."""
    h = jax.nn.gelu(jnp.einsum("...c,ch->...h", x, w1), approximate=False)
    return jnp.einsum("...h,ho->...o", h, w2)


if __name__ == "__main__":
    # Small shapes implied by the module: tokens of dim in_ch, hidden=32.
    B, N = 2, 16
    in_ch, hidden_ch, out_ch = 8, 32, 8

    key = jax.random.PRNGKey(0)
    kx, k1, k2 = jax.random.split(key, 3)

    x = jax.random.normal(kx, (B, N, in_ch), dtype=jnp.float32)
    # Weights stored as (in, out), deterministic init.
    w1 = jax.random.normal(k1, (in_ch, hidden_ch), dtype=jnp.float32) * 0.1
    w2 = jax.random.normal(k2, (hidden_ch, out_ch), dtype=jnp.float32) * 0.1

    out = mlp_forward(x, w1, w2)
    out = jax.block_until_ready(out)

    ref = mlp_ref(x, w1, w2)
    assert out.shape == (B, N, out_ch)
    assert jnp.allclose(out, ref, atol=1e-4, rtol=1e-4), "mismatch vs reference"

    print("KERNEL_OK")
</pallas_src>

<mosaic_0001>
module attributes {stable_mosaic.version = 11 : i64} {
  func.func @_mlp_kernel(%arg0: i32, %arg1: memref<32x8xf32, #tpu.memory_space<vmem>>, %arg2: memref<8x32xf32, #tpu.memory_space<vmem>>, %arg3: memref<32x8xf32, #tpu.memory_space<vmem>>, %arg4: memref<32x8xf32, #tpu.memory_space<vmem>>) attributes {dimension_semantics = [#tpu.dimension_semantics<parallel>], iteration_bounds = array<i64: 1>, scalar_prefetch = 0 : i64, scratch_operands = 0 : i64, tpu.core_type = #tpu.core_type<tc>, window_params = [{transform_indices = @transform_0, window_bounds = array<i64: 32, 8>}, {pipeline_mode = #tpu.pipeline_mode<synchronous>, transform_indices = @transform_1, window_bounds = array<i64: 8, 32>}, {pipeline_mode = #tpu.pipeline_mode<synchronous>, transform_indices = @transform_2, window_bounds = array<i64: 32, 8>}, {transform_indices = @transform_3, window_bounds = array<i64: 32, 8>}]} {
    %c0 = arith.constant 0 : index
    %c0_0 = arith.constant 0 : index
    %0 = vector.load %arg1[%c0, %c0_0] : memref<32x8xf32, #tpu.memory_space<vmem>>, vector<32x8xf32>
    %c0_1 = arith.constant 0 : index
    %c0_2 = arith.constant 0 : index
    %1 = vector.load %arg2[%c0_1, %c0_2] : memref<8x32xf32, #tpu.memory_space<vmem>>, vector<8x32xf32>
    %cst = arith.constant dense<0.000000e+00> : vector<32x32xf32>
    %2 = tpu.matmul %0, %1, %cst {dimension_numbers = #tpu.dot_dimension_numbers<[1], [0], [0], [1], [0, 0, 1, 1], [], []>} : vector<32x8xf32>, vector<8x32xf32>, vector<32x32xf32> -> vector<32x32xf32>
    %cst_3 = arith.constant 5.000000e-01 : f32
    %3 = vector.broadcast %cst_3 : f32 to vector<32x32xf32>
    %4 = arith.mulf %3, %2 : vector<32x32xf32>
    %cst_4 = arith.constant 0.707106769 : f32
    %5 = vector.broadcast %cst_4 : f32 to vector<32x32xf32>
    %6 = arith.mulf %2, %5 : vector<32x32xf32>
    %cst_5 = arith.constant 0.000000e+00 : f32
    %7 = vector.broadcast %cst_5 : f32 to vector<32x32xf32>
    %8 = arith.cmpf olt, %6, %7 : vector<32x32xf32>
    %cst_6 = arith.constant -1.000000e+00 : f32
    %cst_7 = arith.constant 1.000000e+00 : f32
    %9 = vector.broadcast %cst_6 : f32 to vector<32x32xf32>
    %10 = vector.broadcast %cst_7 : f32 to vector<32x32xf32>
    %11 = arith.select %8, %9, %10 : vector<32x32xi1>, vector<32x32xf32>
    %12 = math.absf %6 : vector<32x32xf32>
    %cst_8 = arith.constant 0.327591091 : f32
    %13 = vector.broadcast %cst_8 : f32 to vector<32x32xf32>
    %14 = arith.mulf %13, %12 : vector<32x32xf32>
    %cst_9 = arith.constant 1.000000e+00 : f32
    %15 = vector.broadcast %cst_9 : f32 to vector<32x32xf32>
    %16 = arith.addf %15, %14 : vector<32x32xf32>
    %cst_10 = arith.constant 1.000000e+00 : f32
    %17 = vector.broadcast %cst_10 : f32 to vector<32x32xf32>
    %18 = arith.divf %17, %16 : vector<32x32xf32>
    %cst_11 = arith.constant 1.06140542 : f32
    %19 = vector.broadcast %cst_11 : f32 to vector<32x32xf32>
    %20 = arith.mulf %18, %19 : vector<32x32xf32>
    %cst_12 = arith.constant -1.45315206 : f32
    %21 = vector.broadcast %cst_12 : f32 to vector<32x32xf32>
    %22 = arith.addf %21, %20 : vector<32x32xf32>
    %23 = arith.mulf %18, %22 : vector<32x32xf32>
    %cst_13 = arith.constant 1.42141378 : f32
    %24 = vector.broadcast %cst_13 : f32 to vector<32x32xf32>
    %25 = arith.addf %24, %23 : vector<32x32xf32>
    %26 = arith.mulf %18, %25 : vector<32x32xf32>
    %cst_14 = arith.constant -0.284496725 : f32
    %27 = vector.broadcast %cst_14 : f32 to vector<32x32xf32>
    %28 = arith.addf %27, %26 : vector<32x32xf32>
    %29 = arith.mulf %18, %28 : vector<32x32xf32>
    %cst_15 = arith.constant 0.254829586 : f32
    %30 = vector.broadcast %cst_15 : f32 to vector<32x32xf32>
    %31 = arith.addf %30, %29 : vector<32x32xf32>
    %32 = arith.mulf %18, %31 : vector<32x32xf32>
    %cst_16 = arith.constant 0.000000e+00 : f32
    %33 = vector.broadcast %cst_16 : f32 to vector<32x32xf32>
    %34 = arith.subf %33, %12 : vector<32x32xf32>
    %35 = arith.mulf %34, %12 : vector<32x32xf32>
    %36 = math.exp %35 : vector<32x32xf32>
    %37 = arith.mulf %32, %36 : vector<32x32xf32>
    %cst_17 = arith.constant 1.000000e+00 : f32
    %38 = vector.broadcast %cst_17 : f32 to vector<32x32xf32>
    %39 = arith.subf %38, %37 : vector<32x32xf32>
    %40 = arith.mulf %11, %39 : vector<32x32xf32>
    %cst_18 = arith.constant 1.000000e+00 : f32
    %41 = vector.broadcast %cst_18 : f32 to vector<32x32xf32>
    %42 = arith.addf %41, %40 : vector<32x32xf32>
    %43 = arith.mulf %4, %42 : vector<32x32xf32>
    %c0_19 = arith.constant 0 : index
    %c0_20 = arith.constant 0 : index
    %44 = vector.load %arg3[%c0_19, %c0_20] : memref<32x8xf32, #tpu.memory_space<vmem>>, vector<32x8xf32>
    %cst_21 = arith.constant dense<0.000000e+00> : vector<32x8xf32>
    %45 = tpu.matmul %43, %44, %cst_21 {dimension_numbers = #tpu.dot_dimension_numbers<[1], [0], [0], [1], [0, 0, 1, 1], [], []>} : vector<32x32xf32>, vector<32x8xf32>, vector<32x8xf32> -> vector<32x8xf32>
    %c0_22 = arith.constant 0 : index
    %c0_23 = arith.constant 0 : index
    %46 = vector.load %arg4[%c0_22, %c0_23] : memref<32x8xf32, #tpu.memory_space<vmem>>, vector<32x8xf32>
    tpu.vector_store %arg4[%c0_22, %c0_23], %45 {strides = array<i32>} : memref<32x8xf32, #tpu.memory_space<vmem>>, vector<32x8xf32>,
    return
  }
  func.func @transform_0(%arg0: i32) -> (i32, i32) {
    %c0_i32 = arith.constant 0 : i32
    %c0_i32_0 = arith.constant 0 : i32
    return %arg0, %c0_i32 : i32, i32
  }
  func.func @transform_1(%arg0: i32) -> (i32, i32) {
    %c0_i32 = arith.constant 0 : i32
    %c0_i32_0 = arith.constant 0 : i32
    %c0_i32_1 = arith.constant 0 : i32
    return %c0_i32, %c0_i32_0 : i32, i32
  }
  func.func @transform_2(%arg0: i32) -> (i32, i32) {
    %c0_i32 = arith.constant 0 : i32
    %c0_i32_0 = arith.constant 0 : i32
    %c0_i32_1 = arith.constant 0 : i32
    return %c0_i32, %c0_i32_0 : i32, i32
  }
  func.func @transform_3(%arg0: i32) -> (i32, i32) {
    %c0_i32 = arith.constant 0 : i32
    %c0_i32_0 = arith.constant 0 : i32
    return %arg0, %c0_i32 : i32, i32
  }
}

</mosaic_0001>

<bundles_post_ra>
// kernel: mlp_forward.1
= control target key start
LH: loop header
LB: loop body
LE: loop exit
PB: predicated region body
PF: predicated region fallthrough
CT: control target
= control target key end

     0   :  { %vm19_vm0 = vcmask 64512   ;;  %vm229_vm4 = vcmask 261120   ;;  %s511_s1 = inlined_call_operand.vmem [shape: f32[8,32], index: 1, kind: input, shape index: {}]   ;;  %s512_s0 = inlined_call_operand.vmem [shape: f32[32,8], index: 0, kind: input, shape index: {}]   ;;  %s513_s2 = inlined_call_operand.vmem [shape: f32[32,8], index: 2, kind: input, shape index: {}]   ;;  %s514_s3 = inlined_call_operand.vmem [shape: f32[32,8], index: 3, kind: output, shape index: {}]  }
   0x1   :  { %v18_v0 = vld [vmem:[%s511_s1] sm:$0xff]  ;;  %v15_v2 = vld [vmem:[%s512_s0 + $0x8] sm:$0xff]  ;;  %v16_v3 = vld [vmem:[%s512_s0 + $0x10] sm:$0xff] }
   0x2   :  { %v14_v1 = vld [vmem:[%s512_s0] sm:$0xff]  ;;  %356 = vmatprep.subr.mxu0 %v18_v0  ;;  %v17_v4 = vld [vmem:[%s512_s0 + $0x18] sm:$0xff]  ;;  %v226_v6 = vld [vmem:[%s513_s2 + $0x8] sm:$0xff] }
   0x3   :  { %358 = vmatprep.mubr.msk.f32.mxu0 %vm19_vm0, %v14_v1  ;;  %357 = vmatpush3.msra.mxu0 %v18_v0  ;;  %v225_v5 = vld [vmem:[%s513_s2] sm:$0xff]  ;;  %v227_v8 = vld [vmem:[%s513_s2 + $0x10] sm:$0xff]  ;;  %v228_v9 = vld [vmem:[%s513_s2 + $0x18] sm:$0xff] }
   0x4   :  { %359 = vmatmul.mubr.msk.f32.vlgmr.msra.gmra.mrb[0].mxu0 %vm19_vm0, %v15_v2  ;;  %v378_v7 = vpack.c.bf16 %v226_v6, %v225_v5  ;;  %v382_v10 = vpack.c.bf16 %v228_v9, %v227_v8 }
   0x5   :  { %361 = vmatprep.mubr.msk.f32.mxu0 %vm19_vm0, %v16_v3 }
   0x6   :  { %379 = vmatprep.subr.bf16.mxu0 %v378_v7  ;;  %386 = vmatprep.subr.bf16.mxu1 %v378_v7 }
   0x7   :  { %381 = vmatpush3.bf16.msra.mxu0 %v378_v7  ;;  %388 = vmatpush3.bf16.msra.mxu1 %v378_v7 }
   0x8   :  { %362 = vmatmul.mubr.msk.f32.gmra.mrb[2].mxu0 %vm19_vm0, %v17_v4  ;;  %383 = vmatprep.subr.bf16.mxu0 %v382_v10 }
   0x9   :  { %387 = vmatprep.subr.bf16.mxu1 %v382_v10 }
   0xb   :  { %385 = vmatpush3.bf16.msra.mxu0 %v382_v10  ;;  %389 = vmatpush3.bf16.msra.mxu1 %v382_v10 }
  0xd7   :  { %v459_v11 = vpop.f32.mrb[0].mxu0 }
  0xd8   :  { %v462_v12 = vmul.f32 0.70710677, %v459_v11  ;;  %v464_v13 = vpop.f32.mrb[1].mxu0 }
  0xd9   :  { %v467_v14 = vmul.f32 0.70710677, %v464_v13 }
  0xda   :  { %v134_v15 = vand.u32 2147483647, %v462_v12  ;;  %vm126_vm1 = vcmp.lt.f32.partialorder %v462_v12, 0.0 }
  0xdb   :  { %v133_v16 = vand.u32 2147483647, %v467_v14  ;;  %v471_v17 = vpop.f32.mrb[2].mxu0  ;;  %vm125_vm2 = vcmp.lt.f32.partialorder %v467_v14, 0.0  ;;  %v117_v14 = vmul.f32 0.5, %v464_v13 }
  0xdc   :  { %v138_v18 = vmul.f32 0.3275911, %v134_v15  ;;  %v473_v19 = vpop.f32.mrb[3].mxu0  ;;  %v476_v21 = vmul.f32 0.70710677, %v471_v17  ;;  %v190_v30 = vsub.f32 0.0, %v134_v15 }
  0xdd   :  { %v137_v20 = vmul.f32 0.3275911, %v133_v16  ;;  %v479_v23 = vmul.f32 0.70710677, %v473_v19  ;;  %v189_v32 = vsub.f32 0.0, %v133_v16 }
  0xde   :  { %v142_v22 = vadd.f32 1.0, %v138_v18  ;;  %v136_v25 = vand.u32 2147483647, %v476_v21  ;;  %v194_v34 = vmul.f32 %v190_v30, %v134_v15  ;;  %vm128_vm3 = vcmp.lt.f32.partialorder %v476_v21, 0.0 }
  0xdf   :  { %v141_v24 = vadd.f32 1.0, %v137_v20  ;;  %v135_v27 = vand.u32 2147483647, %v479_v23  ;;  %v193_v37 = vmul.f32 %v189_v32, %v133_v16  ;;  %vm127_vm5 = vcmp.lt.f32.partialorder %v479_v23, 0.0 }
  0xe0   :  { %391 = vrcp.f32 %v142_v22  ;;  %v140_v26 = vmul.f32 0.3275911, %v136_v25  ;;  %v192_v38 = vsub.f32 0.0, %v136_v25  ;;  %v199_v41 = vmul.f32 1.442695, %v194_v34 }
  0xe1   :  { %393 = vrcp.f32 %v141_v24  ;;  %v139_v29 = vmul.f32 0.3275911, %v135_v27  ;;  %v191_v43 = vsub.f32 0.0, %v135_v27  ;;  %v197_v46 = vmul.f32 1.442695, %v193_v37 }
  0xe2   :  { %v144_v28 = vadd.f32 1.0, %v140_v26  ;;  %v196_v47 = vmul.f32 %v192_v38, %v136_v25 }
  0xe3   :  { %v143_v31 = vadd.f32 1.0, %v139_v29  ;;  %v195_v54 = vmul.f32 %v191_v43, %v135_v27  ;;  %v407_v29 = vmov 1.0   ;;  %v118_v43 = vmul.f32 0.5, %v459_v11 }
  0xe4   :  { %395 = vrcp.f32 %v144_v28  ;;  %v203_v56 = vmul.f32 1.442695, %v196_v47  ;;  %v130_v30 = vsel %vm126_vm1, -1.0, %v407_v29  ;;  %v131_v21 = vsel %vm127_vm5, -1.0, %v407_v29 }
  0xe5   :  { %397 = vrcp.f32 %v143_v31  ;;  %v201_v0 = vmul.f32 1.442695, %v195_v54  ;;  %v120_v11 = vmul.f32 0.5, %v471_v17 }
  0xe6   :  { %399 = vpow2.f32 %v199_v41 }
  0xe7   :  { %401 = vpow2.f32 %v197_v46 }
  0xe8   :  { %403 = vpow2.f32 %v203_v56 }
  0xe9   :  { %405 = vpow2.f32 %v201_v0 }
  0xea   :  { %v392_v33 = vpop.eup %391 }
  0xeb   :  { %v394_v35 = vpop.eup %393  ;;  %v154_v36 = vmul.f32 1.0614054, %v392_v33 }
  0xec   :  { %v153_v39 = vmul.f32 1.0614054, %v394_v35 }
  0xed   :  { %v158_v40 = vadd.f32 -1.4531521, %v154_v36  ;;  %v129_v36 = vsel %vm125_vm2, -1.0, %v407_v29 }
  0xee   :  { %v157_v42 = vadd.f32 -1.4531521, %v153_v39  ;;  %v396_v44 = vpop.eup %395 }
  0xef   :  { %v162_v45 = vmul.f32 %v392_v33, %v158_v40  ;;  %v156_v49 = vmul.f32 1.0614054, %v396_v44  ;;  %v398_v51 = vpop.eup %397 }
  0xf0   :  { %v161_v48 = vmul.f32 %v394_v35, %v157_v42  ;;  %v155_v57 = vmul.f32 1.0614054, %v398_v51  ;;  %v400_v15 = vpop.eup %399 }
  0xf1   :  { %v166_v50 = vadd.f32 1.4214138, %v162_v45  ;;  %v160_v53 = vadd.f32 -1.4531521, %v156_v49  ;;  %v402_v20 = vpop.eup %401  ;;  %v132_v45 = vsel %vm128_vm3, -1.0, %v407_v29 }
  0xf2   :  { %v165_v52 = vadd.f32 1.4214138, %v161_v48  ;;  %v159_v61 = vadd.f32 -1.4531521, %v155_v57 }
  0xf3   :  { %v170_v55 = vmul.f32 %v392_v33, %v166_v50  ;;  %v164_v59 = vmul.f32 %v396_v44, %v160_v53 }
  0xf4   :  { %v169_v58 = vmul.f32 %v394_v35, %v165_v52  ;;  %v163_v2 = vmul.f32 %v398_v51, %v159_v61 }
  0xf5   :  { %v174_v60 = vadd.f32 -0.28449672, %v170_v55  ;;  %v168_v63 = vadd.f32 1.4214138, %v164_v59 }
  0xf6   :  { %v173_v62 = vadd.f32 -0.28449672, %v169_v58  ;;  %v167_v6 = vadd.f32 1.4214138, %v163_v2 }
  0xf7   :  { %v178_v1 = vmul.f32 %v392_v33, %v174_v60  ;;  %v172_v4 = vmul.f32 %v396_v44, %v168_v63 }
  0xf8   :  { %v177_v3 = vmul.f32 %v394_v35, %v173_v62  ;;  %v171_v10 = vmul.f32 %v398_v51, %v167_v6 }
  0xf9   :  { %v182_v5 = vadd.f32 0.2548296, %v178_v1  ;;  %v176_v8 = vadd.f32 -0.28449672, %v172_v4 }
  0xfa   :  { %v181_v7 = vadd.f32 0.2548296, %v177_v3  ;;  %v175_v24 = vadd.f32 -0.28449672, %v171_v10 }
  0xfb   :  { %v186_v9 = vmul.f32 %v392_v33, %v182_v5  ;;  %v180_v18 = vmul.f32 %v396_v44, %v176_v8  ;;  %v404_v33 = vpop.eup %403 }
  0xfc   :  { %v185_v16 = vmul.f32 %v394_v35, %v181_v7  ;;  %v179_v28 = vmul.f32 %v398_v51, %v175_v24  ;;  %v406_v40 = vpop.eup %405 }
  0xfd   :  { %v206_v22 = vmul.f32 %v400_v15, %v186_v9  ;;  %v184_v26 = vadd.f32 0.2548296, %v180_v18 }
  0xfe   :  { %v205_v25 = vmul.f32 %v402_v20, %v185_v16  ;;  %v183_v35 = vadd.f32 0.2548296, %v179_v28 }
  0xff   :  { %v210_v27 = vsub.f32 1.0, %v206_v22  ;;  %v188_v32 = vmul.f32 %v396_v44, %v184_v26 }
 0x100   :  { %v209_v31 = vsub.f32 1.0, %v205_v25  ;;  %v187_v39 = vmul.f32 %v398_v51, %v183_v35  ;;  %v119_v51 = vmul.f32 0.5, %v473_v19 }
 0x101   :  { %v214_v34 = vmul.f32 %v210_v27, %v130_v30  ;;  %v208_v12 = vmul.f32 %v404_v33, %v188_v32 }
 0x102   :  { %v213_v37 = vmul.f32 %v209_v31, %v129_v36  ;;  %v207_v44 = vmul.f32 %v406_v40, %v187_v39 }
 0x103   :  { %v218_v38 = vadd.f32 1.0, %v214_v34  ;;  %v212_v42 = vsub.f32 1.0, %v208_v12 }
 0x104   :  { %v217_v41 = vadd.f32 1.0, %v213_v37  ;;  %v211_v49 = vsub.f32 1.0, %v207_v44 }
 0x105   :  { %v216_v47 = vmul.f32 %v212_v42, %v132_v45  ;;  %v222_v48 = vmul.f32 %v218_v38, %v118_v43 }
 0x106   :  { %v221_v46 = vmul.f32 %v217_v41, %v117_v14  ;;  %v215_v50 = vmul.f32 %v211_v49, %v131_v21 }
 0x107   :  { %v220_v13 = vadd.f32 1.0, %v216_v47 }
 0x108   :  { %372 = vmatprep.mubr.msk.f32.mxu0 %vm229_vm4, %v221_v46  ;;  %v219_v52 = vadd.f32 1.0, %v215_v50 }
 0x109   :  { %373 = vmatmul.mubr.msk.f32.vlgmr.msra.gmra.mrb[4].mxu0 %vm229_vm4, %v222_v48  ;;  %v224_v54 = vmul.f32 %v220_v13, %v120_v11 }
 0x10a   :  { %v223_v53 = vmul.f32 %v219_v52, %v119_v51 }
 0x10c   :  { %375 = vmatprep.mubr.msk.f32.mxu1 %vm229_vm4, %v223_v53 }
 0x10d   :  { %376 = vmatmul.mubr.msk.f32.vlgmr.msra.gmra.mrb[0].mxu1 %vm229_vm4, %v224_v54 }
 0x1dc   :  { %v374_v23 = vpop.f32.mrb[4].mxu0 }
 0x1dd   :  { %328 = vst.msk [vmem:[%s514_s3 + $0x8] sm:$0xff] %vm19_vm0, %v374_v23  ;;  %v308_v55 = vpop.f32.mrb[5].mxu0 }
 0x1de   :  { %327 = vst.msk [vmem:[%s514_s3] sm:$0xff] %vm19_vm0, %v308_v55 }
 0x1e0   :  { %v377_v19 = vpop.f32.mrb[0].mxu1 }
 0x1e1   :  { %330 = vst.msk [vmem:[%s514_s3 + $0x18] sm:$0xff] %vm19_vm0, %v377_v19  ;;  %v318_v17 = vpop.f32.mrb[1].mxu1 }
 0x1e2   :  { %329 = vst.msk [vmem:[%s514_s3 + $0x10] sm:$0xff] %vm19_vm0, %v318_v17 }

</bundles_post_ra>
